<compile_context>
chip_gen: v7x
topology: tpu7x:2x2x1
jax: 0.10.0
libtpu: 0.0.40
codegen_flags: <defaults>
</compile_context>

<pallas_src>
import functools

import jax
import jax.numpy as jnp
from jax.experimental import pallas as pl
from jax.experimental.pallas import tpu as pltpu


def _rmsnorm_kernel(x_ref, scale_ref, o_ref, *, d, d_x, eps):
    # x_ref: (tile_rows, d), scale_ref: (1, d), o_ref: (tile_rows, d)
    x = x_ref[...].astype(jnp.float32)

    if d_x == d:
        # default path (p = -1): no masking pass at all
        x_part = x
    elif d_x % 128 == 0:
        # lane-aligned partial norm: static slice is free layout-wise
        x_part = x[:, :d_x]
    else:
        # unaligned partial norm: fall back to an iota mask
        col = jax.lax.broadcasted_iota(jnp.int32, x.shape, dimension=1)
        x_part = jnp.where(col < d_x, x, 0.0)

    # ||x||_2 along last dim, then rms = norm / sqrt(d_x)  (matches torch code)
    sq_sum = jnp.sum(x_part * x_part, axis=-1, keepdims=True)     # (tile, 1)
    rms_x = jnp.sqrt(sq_sum) * (float(d_x) ** -0.5)               # (tile, 1)

    # Per-row reciprocal (tile x 1 elems, EUP) + broadcast multiply instead of
    # a full-tile divide.  approx=False keeps this within ~1 ulp of x/(rms+eps).
    inv_rms = pl.reciprocal(rms_x + eps, approx=False)

    scale = scale_ref[...].astype(jnp.float32)                    # (1, d)
    # Kept in f32 for accuracy; VPU slot has plenty of slack for a mem-bound
    # streaming op on v5e/v6e (only revisit if a v7x bundle dump shows VALU
    # above ~80%).
    out = (x * inv_rms) * scale
    o_ref[...] = out.astype(o_ref.dtype)


def _round_up(x, m):
    return ((x + m - 1) // m) * m


def _vmem_capacity_bytes():
    """Per-TensorCore VMEM capacity, with per-generation fallbacks."""
    kind = ""
    try:
        kind = jax.devices()[0].device_kind.lower()
    except Exception:
        pass
    is_v7 = ("v7" in kind) or ("tpu7" in kind)

    cap = None
    try:
        cap = int(pltpu.get_tpu_info().vmem_capacity_bytes)
    except Exception:
        cap = None

    if cap is None:
        if ("v5" in kind) or ("v6" in kind):
            cap = 128 * 1024 * 1024      # v5e / v6e: 128 MiB per core
        elif is_v7:
            cap = 64 * 1024 * 1024       # v7x: 64 MiB per core
        else:
            cap = 64 * 1024 * 1024       # unknown chip: be conservative

    # Clamp to per-TensorCore capacity: never trust a chip-level (2x) report
    # on v7x, and never assume more than 128 MiB anywhere.
    cap = min(cap, 128 * 1024 * 1024)
    if is_v7:
        cap = min(cap, 64 * 1024 * 1024)
    return cap


def _pick_tile_rows(rows, d, dtype, vmem_cap):
    itemsize = jnp.dtype(dtype).itemsize
    # native sublane packing: 8 rows (f32), 16 (bf16), 32 (int8/fp8)
    sublane = {4: 8, 2: 16, 1: 32}.get(itemsize, 8)

    # Live VMEM per row in the pipeline:
    #   2x double-buffered input tile + 2x double-buffered output tile
    #   + ~2 f32 intermediates for the tile being computed.
    bytes_per_row_live = d * (4 * itemsize + 2 * 4)
    vmem_rows = max(sublane, int(vmem_cap * 0.4) // max(bytes_per_row_live, 1))

    # Byte-based per-step target: move enough HBM bytes (in + out) per grid
    # step to amortize the ~0.35 us fixed step cost.  On v7x the 0.4*VMEM
    # budget above is the binding cap; this target only kicks in when VMEM
    # would otherwise allow needlessly huge tiles.
    target_step_bytes = 16 * 1024 * 1024
    target_rows = max(sublane, target_step_bytes // max(2 * d * itemsize, 1))

    tile = min(vmem_rows, target_rows)
    tile = max(sublane, (tile // sublane) * sublane)

    if tile >= rows:
        # Whole problem fits one tile.  Still emit 2 grid steps when there is
        # enough work, so both v7x TensorCores get a share (harmless on
        # single-TC v5e/v6e).
        if rows >= 2 * sublane:
            tile = _round_up(pl.cdiv(rows, 2), sublane)
        else:
            # Full-extent block (always a legal block shape), single step.
            tile = rows
        return tile, sublane

    # Prefer a tile that divides rows exactly (uniform blocks, no ragged
    # tail); rows = prod(leading dims) usually has plenty of divisors.
    if rows % tile != 0:
        cand = (tile // sublane) * sublane
        lo = max(sublane, tile // 2)
        while cand >= lo:
            if rows % cand == 0:
                tile = cand
                break
            cand -= sublane
        # If no divisor found we keep the ragged last block (handled by
        # Pallas: masked writes for the OOB tail rows).
    return tile, sublane


def rmsnorm(x, scale, *, p=-1.0, eps=1e-8, tile_rows=None):
    """Pallas RMSNorm matching the PyTorch module's forward (bias=False)."""
    orig_shape = x.shape
    d = x.shape[-1]
    assert scale.shape[-1] == d

    if p < 0.0 or p > 1.0:
        d_x = d
    else:
        # guard d_x >= 1 (torch's d_x == 0 case would divide by zero)
        d_x = max(1, int(d * p))

    rows = 1
    for s in orig_shape[:-1]:
        rows *= s
    x2 = x.reshape(rows, d)
    scale2 = scale.reshape(1, d)

    vmem_cap = _vmem_capacity_bytes()
    if tile_rows is None:
        tile, sublane = _pick_tile_rows(rows, d, x.dtype, vmem_cap)
    else:
        itemsize = jnp.dtype(x.dtype).itemsize
        sublane = {4: 8, 2: 16, 1: 32}.get(itemsize, 8)
        tile = max(sublane, (int(tile_rows) // sublane) * sublane)
        if tile >= rows:
            tile = rows  # full-extent block is always legal

    grid = (pl.cdiv(rows, tile),)
    kernel = functools.partial(_rmsnorm_kernel, d=d, d_x=d_x, eps=eps)

    out = pl.pallas_call(
        kernel,
        out_shape=jax.ShapeDtypeStruct((rows, d), x.dtype),
        grid_spec=pltpu.PrefetchScalarGridSpec(
            num_scalar_prefetch=0,
            grid=grid,
            in_specs=[
                pl.BlockSpec((tile, d), lambda i: (i, 0)),
                pl.BlockSpec((1, d), lambda i: (0, 0)),
            ],
            out_specs=pl.BlockSpec((tile, d), lambda i: (i, 0)),
        ),
        compiler_params=pltpu.CompilerParams(
            dimension_semantics=("parallel",),
            # raise the scoped VMEM limit so the bandwidth-optimal tiles
            # compile (default scoped limit is far below physical per-core
            # VMEM); 0.75x per-core capacity leaves headroom on v7x's 64 MiB.
            vmem_limit_bytes=int(vmem_cap * 0.75),
        ),
    )(x2, scale2)

    return out.reshape(orig_shape)


def rmsnorm_ref(x, scale, *, p=-1.0, eps=1e-8):
    d = x.shape[-1]
    if p < 0.0 or p > 1.0:
        d_x = d
        norm_x = jnp.linalg.norm(x, axis=-1, keepdims=True)
    else:
        d_x = max(1, int(d * p))
        norm_x = jnp.linalg.norm(x[..., :d_x], axis=-1, keepdims=True)
    rms_x = norm_x * (d_x ** -0.5)
    return scale * (x / (rms_x + eps))


if __name__ == "__main__":
    key = jax.random.PRNGKey(0)

    # 1) default path: f32, p = -1 (full RMSNorm), shapes from the module spec
    batch, seq, hidden = 2, 8, 32
    x = jax.random.normal(key, (batch, seq, hidden), dtype=jnp.float32)
    scale = jnp.ones((hidden,), dtype=jnp.float32)  # nn.Parameter(torch.ones(d))

    out = rmsnorm(x, scale, p=-1.0, eps=1e-8)
    out = jax.block_until_ready(out)
    ref = rmsnorm_ref(x, scale, p=-1.0, eps=1e-8)
    assert out.shape == x.shape
    assert jnp.allclose(out, ref, atol=1e-5, rtol=1e-5)

    # 2) bf16 input, odd row count (single full-extent block) + partial p
    x_b = jax.random.normal(jax.random.PRNGKey(1), (3, 5, 128), dtype=jnp.bfloat16)
    s_b = jnp.ones((128,), dtype=jnp.bfloat16)
    out_b = jax.block_until_ready(rmsnorm(x_b, s_b, p=0.5, eps=1e-8))
    ref_b = rmsnorm_ref(x_b.astype(jnp.float32), s_b.astype(jnp.float32),
                        p=0.5, eps=1e-8)
    assert out_b.shape == x_b.shape
    assert jnp.allclose(out_b.astype(jnp.float32), ref_b, atol=2e-2, rtol=2e-2)

    # 3) f32, row count that forces a ragged last block (masked tail writes)
    x_c = jax.random.normal(jax.random.PRNGKey(2), (5, 7, 128), dtype=jnp.float32)
    s_c = jax.random.normal(jax.random.PRNGKey(3), (128,), dtype=jnp.float32)
    out_c = jax.block_until_ready(rmsnorm(x_c, s_c, p=-1.0, eps=1e-8, tile_rows=24))
    ref_c = rmsnorm_ref(x_c, s_c, p=-1.0, eps=1e-8)
    assert out_c.shape == x_c.shape
    assert jnp.allclose(out_c, ref_c, atol=1e-5, rtol=1e-5)

    print("KERNEL_OK")
</pallas_src>

<mosaic_0001>
module attributes {stable_mosaic.version = 11 : i64} {
  func.func @_rmsnorm_kernel(%arg0: i32, %arg1: memref<8x32xf32, #tpu.memory_space<vmem>>, %arg2: memref<1x32xf32, #tpu.memory_space<vmem>>, %arg3: memref<8x32xf32, #tpu.memory_space<vmem>>) attributes {dimension_semantics = [#tpu.dimension_semantics<parallel>], iteration_bounds = array<i64: 2>, scalar_prefetch = 0 : i64, scratch_operands = 0 : i64, tpu.core_type = #tpu.core_type<tc>, window_params = [{transform_indices = @transform_0, window_bounds = array<i64: 8, 32>}, {pipeline_mode = #tpu.pipeline_mode<synchronous>, transform_indices = @transform_1, window_bounds = array<i64: 1, 32>}, {transform_indices = @transform_2, window_bounds = array<i64: 8, 32>}]} {
    %c0 = arith.constant 0 : index
    %c0_0 = arith.constant 0 : index
    %0 = vector.load %arg1[%c0, %c0_0] : memref<8x32xf32, #tpu.memory_space<vmem>>, vector<8x32xf32>
    %1 = arith.mulf %0, %0 : vector<8x32xf32>
    %cst = arith.constant dense<0.000000e+00> : vector<8xf32>
    %2 = vector.multi_reduction <add>, %1, %cst [1] : vector<8x32xf32> to vector<8xf32>
    %3 = vector.shape_cast %2 : vector<8xf32> to vector<8x1xf32>
    %4 = math.sqrt %3 : vector<8x1xf32>
    %cst_1 = arith.constant 0.176776692 : f32
    %5 = vector.broadcast %cst_1 : f32 to vector<8x1xf32>
    %6 = arith.mulf %4, %5 : vector<8x1xf32>
    %cst_2 = arith.constant 9.99999993E-9 : f32
    %7 = vector.broadcast %cst_2 : f32 to vector<8x1xf32>
    %8 = arith.addf %6, %7 : vector<8x1xf32>
    %9 = tpu.reciprocal %8 : vector<8x1xf32> -> vector<8x1xf32>
    %c0_3 = arith.constant 0 : index
    %c0_4 = arith.constant 0 : index
    %10 = vector.load %arg2[%c0_3, %c0_4] : memref<1x32xf32, #tpu.memory_space<vmem>>, vector<1x32xf32>
    %11 = vector.broadcast %9 : vector<8x1xf32> to vector<8x32xf32>
    %12 = arith.mulf %0, %11 : vector<8x32xf32>
    %13 = vector.broadcast %10 : vector<1x32xf32> to vector<8x32xf32>
    %14 = arith.mulf %12, %13 : vector<8x32xf32>
    %c0_5 = arith.constant 0 : index
    %c0_6 = arith.constant 0 : index
    %15 = vector.load %arg3[%c0_5, %c0_6] : memref<8x32xf32, #tpu.memory_space<vmem>>, vector<8x32xf32>
    tpu.vector_store %arg3[%c0_5, %c0_6], %14 {strides = array<i32>} : memref<8x32xf32, #tpu.memory_space<vmem>>, vector<8x32xf32>,
    return
  }
  func.func @transform_0(%arg0: i32) -> (i32, i32) {
    %c0_i32 = arith.constant 0 : i32
    %c0_i32_0 = arith.constant 0 : i32
    return %arg0, %c0_i32 : i32, i32
  }
  func.func @transform_1(%arg0: i32) -> (i32, i32) {
    %c0_i32 = arith.constant 0 : i32
    %c0_i32_0 = arith.constant 0 : i32
    %c0_i32_1 = arith.constant 0 : i32
    return %c0_i32, %c0_i32_0 : i32, i32
  }
  func.func @transform_2(%arg0: i32) -> (i32, i32) {
    %c0_i32 = arith.constant 0 : i32
    %c0_i32_0 = arith.constant 0 : i32
    return %arg0, %c0_i32 : i32, i32
  }
}

</mosaic_0001>

<bundles_post_ra>
// kernel: tpu_custom_call.1
= control target key start
LH: loop header
LB: loop body
LE: loop exit
PB: predicated region body
PF: predicated region fallthrough
CT: control target
= control target key end

     0   :  { %7 = vsyncpa [#allocation3], 0  ;;  %s613_s0 = inlined_call_operand.hbm [shape: f32[16,32], index: 0, kind: input, shape index: {}]   ;;  %s614_s1 = inlined_call_operand.vmem [shape: f32[1,32], index: 1, kind: input, shape index: {}]   ;;  %s615_s2 = inlined_call_operand.hbm [shape: f32[16,32], index: 2, kind: output, shape index: {}]  }
   0x1   :  { %9 = vsyncpa [#allocation3 + $0x1], 0 }
   0x2   :  { %10 = vsyncpa [#allocation4], 0 }
   0x3   :  { %12 = vsyncpa [#allocation4 + $0x1], 0  ;;  %s447_s9 = smov 0   ;;  %s449_s10 = smov 0  }
   0x4   :  { %s451_s11 = smov 0   ;;  %s453_s12 = smov 0  }
   0x5 LB: > { %s468_s13 = sadd.s32 4294967295, %s428_s12   ;;  %s269_s14 = sadd.s32 4294967294, %s428_s12   ;;  %s428_s12 = sphi %s453_s12, %s630_s12   ;;  %s424_s11 = sphi %s451_s11, %s629_s11   ;;  %s420_s10 = sphi %s449_s10, %s628_s10   ;;  %s416_s9 = sphi %s447_s9, %s627_s9  }
   0x6   : > { %s472_s15 = sadd.s32 1, %s428_s12   ;;  %s25_s16 = sadd.s32 1, %s424_s11 }
   0x7   : > { %s22_s17 = ssub.s32 %s428_s12, %s472_s15  ;;  %p32_p0 = scmp.ne.s32.totalorder %s424_s11, %s420_s10 }
   0x8   : > { %p23_p1 = scmp.eq.s32.totalorder %s22_s17, 0  ;;  %p33_p2 = scmp.eq.s32.totalorder %s428_s12, 0 }
   0x9   : > { %p38_p3 = scmp.ne.s32.totalorder %s420_s10, %s416_s9  ;;  %p39_p4 = scmp.eq.s32.totalorder %s468_s13, 0 }
   0xa   : > { %s484_s18 = scalar_select %p23_p1, %s424_s11, %s25_s16  }
   0xb   : > { %p486_p5 = por %p33_p2, %p32_p0  ;;  %p490_p6 = por %p39_p4, %p38_p3 }
   0xc   : > { %p83_p7 = scmp.eq.s32.totalorder %s468_s13, 1  ;;  %p89_p8 = scmp.eq.s32.totalorder %s269_s14, 1 }
   0xd   : > { %p294_p10 = scmp.lt.s32.totalorder %s428_s12, 2  ;;  %s112_s23 = sand.u32 1, %s424_s11  }
   0xe   : > { %p497_p11 = por %p83_p7, %p32_p0  ;;  %p501_p12 = por %p89_p8, %p38_p3 }
   0xf   : > { %s273_s24 = sshll.u32 %s428_s12, 7  ;;  %s272_s25 = sshll.u32 %s112_s23, 3 }
  0x10   : > { %s619_s21 = scalar_select %p497_p11, 1, 0 }
  0x11   : > { %s620_s22 = scalar_select %p501_p12, 1, 0 }
  0x12   : > { %s510_s28 = scalar_lea.hbm %s613_s0, %s273_s24  ;;  %s116_s29 = scalar_lea.vmem [#allocation2], %s272_s25 }
  0x13   : > { %s123_s30 = sshll.u32 %s116_s29, 4  ;;  %p514_p13 = pnand %p294_p10, %p486_p5  ;;  %s518_s30 = int_to_ptr.vmem [resolvable:$true] %s123_s30 }
  0x14   : > { %s113_s4 = scalar_lea.sflag [#allocation3], %s112_s23  ;;  %s332_s5 = scalar_lea.hbm %s510_s28, 128 }
  0x15   : > { %p333_p2 = scmp.ne.s32.totalorder %s510_s28, %s332_s5  ;;  %p334_p3 = pneg %p514_p13 }
  0x16   : > { %s337_s8 = scalar_lea.hbm %s613_s0, 256  ;;  %p338_p5 = scmp.lt.u32.totalorder %s510_s28, %s613_s0 }
  0x17   : > { %p335_p4 = pnand %p334_p3, %p333_p2  ;;  %p339_p8 = scmp.lt.u32.totalorder %s337_s8, %s332_s5 }
  0x18   : > { %p341_p9 = scmp.lt.u32.totalorder %s332_s5, %s510_s28 }
  0x19   : > { %p336_p7 = pneg %p335_p4  ;;  %p340_p10 = por %p339_p8, %p338_p5 }
  0x1b   : > { %p342_p0 = por %p341_p9, %p340_p10 }
  0x1d   : > { %p343_p1 = pnand %p342_p0, %p336_p7 }
  0x1f   : > { %346 = shalt.err (!%p343_p1)
}
  0x20   : > { %s347_s17 = scalar_lea.vmem %s518_s30, 128  ;;  %s430_s19 = smov [#allocation2]  }
  0x21   : > { %p348_p2 = scmp.ne.s32.totalorder %s518_s30, %s347_s17  ;;  %s352_s23 = sshll.u32 %s430_s19, 4  ;;  %s353_s23 = int_to_ptr.vmem [resolvable:$false] %s352_s23 }
  0x22   : > { %s354_s24 = scalar_lea.vmem %s353_s23, 256  ;;  %p355_p11 = scmp.lt.s32.totalorder %s518_s30, %s353_s23 }
  0x23   : > { %p350_p4 = pnand %p348_p2, %p334_p3  ;;  %p356_p5 = scmp.lt.s32.totalorder %s354_s24, %s347_s17 }
  0x25   : > { %p351_p12 = pneg %p350_p4  ;;  %p357_p8 = por %p356_p5, %p355_p11 }
  0x27   : > { %p358_p9 = pnand %p357_p8, %p351_p12 }
  0x29   : > { %361 = shalt.err (!%p358_p9)
}
  0x2a   : > { %289 = dma.hbm_to_vmem [thread:$0]  (!%p514_p13), %s510_s28, 128, %s518_s30, %s113_s4  }
  0x2b   : > { %p622_p0 = scmp.lt.s32.totalorder %s428_s12, 3  ;;  %p623_p1 = scmp.ge.s32.totalorder %s428_s12, 1 }
  0x2d   : > { %p129_p3 = pnand %p623_p1, %p622_p0 }
  0x2e   : > { %s552_s25 = sand.u32 (!%p129_p3), 1, %s420_s10  }
  0x2f   : > { %132 = sbr.rel (%p129_p3) target bundleno = 249 (0xf9), region = 28  ;;  %s275_s26 = sshll.u32 (!%p129_p3), %s552_s25, 3 }
  0x30   : > { %s135_s27 = scalar_lea.sflag (!%p129_p3), [#allocation3], %s552_s25  ;;  %s138_s29 = scalar_lea.vmem (!%p129_p3), [#allocation2], %s275_s26 }
  0x36   : > { %407 = dma.done.wait (%p490_p6), %s135_s27, 128  }
  0x37   : > { %409 = vsyncadd (%p490_p6), %s135_s27, 4294967168  ;;  %v159_v0 = vld [vmem:[%s138_s29] sm:$0xff]  ;;  %vm161_vm0 = vcmask 261120   ;;  %s279_s30 = sshll.u32 %s468_s13, 7  ;;  %s158_s3 = scalar_lea.vmem [#allocation5], %s275_s26 }
  0x38   : > { %v160_v1 = vmul.f32 %v159_v0, %v159_v0  ;;  %v277_v12 = vld [vmem:[%s614_s1] ss:$0 sm:$0xff]  ;;  %s199_s4 = sshll.u32 %s158_s3, 4  ;;  %s568_s7 = scalar_lea.hbm %s615_s2, %s279_s30  ;;  %s570_s4 = int_to_ptr.vmem [resolvable:$true] %s199_s4 }
  0x39   : > { %s186_s8 = scalar_lea.sflag [#allocation4], %s552_s25  ;;  %s362_s14 = scalar_lea.vmem %s570_s4, 128 }
  0x3a   : > { %v162_v2 = vsel %vm161_vm0, %v160_v1, 0.0  ;;  %p363_p6 = scmp.ne.s32.totalorder %s570_s4, %s362_s14  ;;  %p624_p11 = scmp.ne.s32.totalorder %s619_s21, 0 }
  0x3b   : > { %163 = vadd.xlane.f32.xlu0 %v162_v2  ;;  %s431_s13 = smov [#allocation5]  }
  0x3c   : > { %p364_p12 = pnand %p363_p6, %p624_p11  ;;  %s366_s16 = sshll.u32 %s431_s13, 4  ;;  %s367_s16 = int_to_ptr.vmem [resolvable:$false] %s366_s16 }
  0x3d   : > { %s368_s17 = scalar_lea.vmem %s367_s16, 256  ;;  %p369_p7 = scmp.lt.s32.totalorder %s570_s4, %s367_s16 }
  0x3e   : > { %p365_p13 = pneg %p364_p12  ;;  %p370_p10 = scmp.lt.s32.totalorder %s368_s17, %s362_s14 }
  0x40   : > { %p371_p2 = por %p370_p10, %p369_p7 }
  0x42   : > { %p372_p4 = pnand %p371_p2, %p365_p13 }
  0xc8   : > { %v164_v3 = vpop.xlane.xlu0 %163 }
  0xc9   : > { %328 = vrsqrt.f32 %v164_v3  ;;  %vm167_vm1 = vcmp.eq.f32.partialorder %v164_v3, inf  ;;  %v170_v6 = vand.u32 2147483648, %v164_v3  ;;  %vm169_vm2 = vcmp.eq.f32.partialorder %v164_v3, 0.0 }
  0xd3   : > { %v329_v4 = vpop.eup %328 }
  0xd4   : > { %v166_v5 = vmul.f32 %v329_v4, %v164_v3 }
  0xd6   : > { %v168_v7 = vsel %vm167_vm1, %v164_v3, %v166_v5 }
  0xd7   : > { %v171_v8 = vsel %vm169_vm2, %v170_v6, %v168_v7 }
  0xd8   : > { %v172_v9 = vmul.f32 0.17677669, %v171_v8 }
  0xda   : > { %v173_v10 = vadd.f32 1e-08, %v172_v9 }
  0xdc   : > { %330 = vrcp.f32 %v173_v10 }
  0xe6   : > { %v331_v11 = vpop.eup %330 }
  0xe7   : > { %v176_v13 = vmul.f32 %v331_v11, %v159_v0 }
  0xe9   : > { %v183_v14 = vmul.f32 %v277_v12, %v176_v13 }
  0xeb   : > { %184 = vst.msk [vmem:[%s158_s3] sm:$0xff] %vm161_vm0, %v183_v14 }
  0xec   : > { %375 = shalt.err (!%p372_p4)
}
  0xed   : > { %s376_s19 = scalar_lea.hbm %s568_s7, 128  ;;  %s380_s25 = scalar_lea.hbm %s615_s2, 256 }
  0xee   : > { %p377_p5 = scmp.ne.s32.totalorder %s568_s7, %s376_s19  ;;  %p381_p0 = scmp.lt.u32.totalorder %s568_s7, %s615_s2 }
  0xef   : > { %p382_p1 = scmp.lt.u32.totalorder %s380_s25, %s376_s19  ;;  %p384_p6 = scmp.lt.u32.totalorder %s376_s19, %s568_s7 }
  0xf0   : > { %p378_p8 = pnand %p377_p5, %p624_p11 }
  0xf1   : > { %p383_p3 = por %p382_p1, %p381_p0 }
  0xf2   : > { %p379_p9 = pneg %p378_p8 }
  0xf3   : > { %p385_p12 = por %p384_p6, %p383_p3 }
  0xf5   : > { %p386_p13 = pnand %p385_p12, %p379_p9 }
  0xf7   : > { %389 = shalt.err (!%p386_p13)
}
  0xf8   : > { %284 = dma.vmem_to_hbm [thread:$0]  (%p624_p11), %s570_s4, 128, %s568_s7, %s186_s8  }
  0xf9 PF: > { %s211_s29 = sand.u32 1, %s416_s9   ;;  %p625_p7 = scmp.ne.s32.totalorder %s620_s22, 0 }
  0xfa   : > { %p626_p10 = scmp.ge.s32.totalorder %s428_s12, 2  ;;  %s212_s20 = scalar_lea.sflag [#allocation4], %s211_s29 }
  0xfc   : > { %p291_p2 = pnand %p626_p10, %p625_p7 }
  0xfe   : > { %411 = dma.done.wait (!%p291_p2), %s212_s20, 128  }
  0xff   : > { %413 = vsyncadd (!%p291_p2), %s212_s20, 4294967168  ;;  %p15_p4 = scmp.ge.s32.totalorder %s472_s15, 4   ;;  %s627_s9 = smov %s420_s10 }
 0x100   : > { %s628_s10 = smov %s424_s11  ;;  %s629_s11 = smov %s484_s18 }
 0x101   : > { %s630_s12 = smov %s472_s15  ;;  %17 = sbr.rel (!%p15_p4) target bundleno = 5 (0x5), region = 73 }
 0x108   :  { %217 = vsyncpa [#allocation3], 1 }
 0x109   :  { %219 = vsyncpa [#allocation3 + $0x1], 1 }
 0x10a   :  { %220 = vsyncpa [#allocation4], 1 }
 0x10b   :  { %222 = vsyncpa [#allocation4 + $0x1], 1 }

</bundles_post_ra>
